<compile_context>
chip_gen: v5e
topology: v5e:2x2
jax: 0.10.0
libtpu: 0.0.40
codegen_flags: <defaults>
</compile_context>

<pallas_src>
import functools

import jax
import jax.numpy as jnp
from jax.experimental import pallas as pl
from jax.experimental.pallas import tpu as pltpu


def _round_up(n: int, m: int) -> int:
    return pl.cdiv(n, m) * m


def duelling_kernel(x_ref, w_ref, b_ref, out_ref):
    # x_ref:   (TB, H)      compute dtype (f32 or bf16)
    # w_ref:   (H, A_pad)   compute dtype (folded duelling weights)
    # b_ref:   (1, A_pad)   f32 (folded duelling bias)
    # out_ref: (TB, A_pad)  f32
    acc = jnp.dot(x_ref[...], w_ref[...], preferred_element_type=jnp.float32)
    out_ref[...] = (acc + b_ref[...]).astype(out_ref.dtype)


def fold_duelling_params(wa, ba, wv, bv, *, lane_pad=128, compute_dtype=jnp.float32):
    """Fold value head + mean-subtraction into the advantage head (exact algebra)."""
    H, A = wa.shape
    w = wa - jnp.mean(wa, axis=1, keepdims=True) + wv          # (H, A)
    b = ba - jnp.mean(ba, axis=1, keepdims=True) + bv          # (1, A)
    a_pad = _round_up(max(A, lane_pad), lane_pad)
    w = jnp.pad(w, ((0, 0), (0, a_pad - A))).astype(compute_dtype)
    b = jnp.pad(b, ((0, 0), (0, a_pad - A))).astype(jnp.float32)  # bias/epilogue in f32
    return w, b


def duelling_forward(x, wa, ba, wv, bv, *, block_b=512, compute_dtype=jnp.float32):
    """x: (B, H); wa: (H, A); ba: (1, A); wv: (H, 1); bv: (1, 1) -> (B, A) float32.

    block_b: batch tile (rows per grid step). Kept modest so double-buffered
    x-tiles + resident weights fit well inside v7x's smaller (64 MiB) VMEM.
    """
    B, H = x.shape
    A = wa.shape[1]

    w, b = fold_duelling_params(wa, ba, wv, bv, compute_dtype=compute_dtype)
    a_pad = w.shape[1]

    # Batch tile: multiple of 8 sublanes; pad B up to a tile multiple (zeros),
    # sliced off after the call.
    tb = min(block_b, _round_up(B, 8))
    b_pad = _round_up(B, tb)
    x_p = x.astype(compute_dtype)
    if b_pad != B:
        x_p = jnp.pad(x_p, ((0, b_pad - B), (0, 0)))

    out = pl.pallas_call(
        duelling_kernel,
        out_shape=jax.ShapeDtypeStruct((b_pad, a_pad), jnp.float32),
        grid_spec=pltpu.PrefetchScalarGridSpec(
            num_scalar_prefetch=0,
            grid=(b_pad // tb,),
            in_specs=[
                pl.BlockSpec((tb, H), lambda i: (i, 0)),      # x: tiled over batch
                pl.BlockSpec((H, a_pad), lambda i: (0, 0)),   # folded W': resident
                pl.BlockSpec((1, a_pad), lambda i: (0, 0)),   # folded b': resident
            ],
            out_specs=pl.BlockSpec((tb, a_pad), lambda i: (i, 0)),
        ),
        compiler_params=pltpu.CompilerParams(
            dimension_semantics=("parallel",),  # lets v7x shard batch over 2 TCs
        ),
    )(x_p, w, b)

    return out[:B, :A]


def duelling_reference(x, wa, ba, wv, bv):
    a = x @ wa + ba
    v = x @ wv + bv
    return a + (v - a.mean(axis=-1, keepdims=True))


if __name__ == "__main__":
    H, A = 32, 8  # hidden features, n_actions

    key = jax.random.PRNGKey(0)
    kx, kwa, kba, kwv, kbv = jax.random.split(key, 5)

    # PyTorch Linear stores (out, in); we keep weights pre-transposed as (in, out).
    wa = jax.random.normal(kwa, (H, A), dtype=jnp.float32) * 0.1
    ba = jax.random.normal(kba, (1, A), dtype=jnp.float32) * 0.1
    wv = jax.random.normal(kwv, (H, 1), dtype=jnp.float32) * 0.1
    bv = jax.random.normal(kbv, (1, 1), dtype=jnp.float32) * 0.1

    # 1) f32 path, batch a multiple of the sublane tile.
    B = 8
    x = jax.random.normal(kx, (B, H), dtype=jnp.float32)
    out = jax.block_until_ready(duelling_forward(x, wa, ba, wv, bv))
    ref = duelling_reference(x, wa, ba, wv, bv)
    assert out.shape == (B, A), out.shape
    assert jnp.allclose(out, ref, atol=1e-5, rtol=1e-5), "f32 mismatch vs reference"

    # 2) f32 path, batch NOT a multiple of 8 (exercises wrapper-side padding).
    B2 = 11
    x2 = jax.random.normal(jax.random.PRNGKey(1), (B2, H), dtype=jnp.float32)
    out2 = jax.block_until_ready(duelling_forward(x2, wa, ba, wv, bv))
    ref2 = duelling_reference(x2, wa, ba, wv, bv)
    assert out2.shape == (B2, A), out2.shape
    assert jnp.allclose(out2, ref2, atol=1e-5, rtol=1e-5), "padded-batch mismatch"

    # 3) bf16 inputs/weights, f32 accumulation + epilogue (v6e/v7x fast path).
    out_bf16 = jax.block_until_ready(
        duelling_forward(x, wa, ba, wv, bv, compute_dtype=jnp.bfloat16))
    assert out_bf16.shape == (B, A), out_bf16.shape
    assert jnp.allclose(out_bf16, ref, atol=5e-2, rtol=5e-2), "bf16 mismatch"

    print("KERNEL_OK")
</pallas_src>

<mosaic_0001>
module attributes {stable_mosaic.version = 11 : i64} {
  func.func @duelling_kernel(%arg0: i32, %arg1: memref<8x32xf32, #tpu.memory_space<vmem>>, %arg2: memref<32x128xf32, #tpu.memory_space<vmem>>, %arg3: memref<1x128xf32, #tpu.memory_space<vmem>>, %arg4: memref<8x128xf32, #tpu.memory_space<vmem>>) attributes {dimension_semantics = [#tpu.dimension_semantics<parallel>], iteration_bounds = array<i64: 1>, scalar_prefetch = 0 : i64, scratch_operands = 0 : i64, tpu.core_type = #tpu.core_type<tc>, window_params = [{transform_indices = @transform_0, window_bounds = array<i64: 8, 32>}, {pipeline_mode = #tpu.pipeline_mode<synchronous>, transform_indices = @transform_1, window_bounds = array<i64: 32, 128>}, {pipeline_mode = #tpu.pipeline_mode<synchronous>, transform_indices = @transform_2, window_bounds = array<i64: 1, 128>}, {transform_indices = @transform_3, window_bounds = array<i64: 8, 128>}]} {
    %c0 = arith.constant 0 : index
    %c0_0 = arith.constant 0 : index
    %0 = vector.load %arg1[%c0, %c0_0] : memref<8x32xf32, #tpu.memory_space<vmem>>, vector<8x32xf32>
    %c0_1 = arith.constant 0 : index
    %c0_2 = arith.constant 0 : index
    %1 = vector.load %arg2[%c0_1, %c0_2] : memref<32x128xf32, #tpu.memory_space<vmem>>, vector<32x128xf32>
    %cst = arith.constant dense<0.000000e+00> : vector<8x128xf32>
    %2 = tpu.matmul %0, %1, %cst {dimension_numbers = #tpu.dot_dimension_numbers<[1], [0], [0], [1], [0, 0, 1, 1], [], []>} : vector<8x32xf32>, vector<32x128xf32>, vector<8x128xf32> -> vector<8x128xf32>
    %c0_3 = arith.constant 0 : index
    %c0_4 = arith.constant 0 : index
    %3 = vector.load %arg3[%c0_3, %c0_4] : memref<1x128xf32, #tpu.memory_space<vmem>>, vector<1x128xf32>
    %4 = vector.broadcast %3 : vector<1x128xf32> to vector<8x128xf32>
    %5 = arith.addf %2, %4 : vector<8x128xf32>
    %c0_5 = arith.constant 0 : index
    %c0_6 = arith.constant 0 : index
    %6 = vector.load %arg4[%c0_5, %c0_6] : memref<8x128xf32, #tpu.memory_space<vmem>>, vector<8x128xf32>
    tpu.vector_store %arg4[%c0_5, %c0_6], %5 {strides = array<i32>} : memref<8x128xf32, #tpu.memory_space<vmem>>, vector<8x128xf32>,
    return
  }
  func.func @transform_0(%arg0: i32) -> (i32, i32) {
    %c0_i32 = arith.constant 0 : i32
    %c0_i32_0 = arith.constant 0 : i32
    return %arg0, %c0_i32 : i32, i32
  }
  func.func @transform_1(%arg0: i32) -> (i32, i32) {
    %c0_i32 = arith.constant 0 : i32
    %c0_i32_0 = arith.constant 0 : i32
    %c0_i32_1 = arith.constant 0 : i32
    return %c0_i32, %c0_i32_0 : i32, i32
  }
  func.func @transform_2(%arg0: i32) -> (i32, i32) {
    %c0_i32 = arith.constant 0 : i32
    %c0_i32_0 = arith.constant 0 : i32
    %c0_i32_1 = arith.constant 0 : i32
    return %c0_i32, %c0_i32_0 : i32, i32
  }
  func.func @transform_3(%arg0: i32) -> (i32, i32) {
    %c0_i32 = arith.constant 0 : i32
    %c0_i32_0 = arith.constant 0 : i32
    return %arg0, %c0_i32 : i32, i32
  }
}

</mosaic_0001>

<bundles_post_ra>
// kernel: tpu_custom_call.1
= control target key start
LH: loop header
LB: loop body
LE: loop exit
PB: predicated region body
PF: predicated region fallthrough
CT: control target
= control target key end

     0   :  { %8 = vsyncpa [#allocation3], 0  ;;  %s219_s0 = inlined_call_operand.hbm [shape: f32[8,32], index: 0, kind: input, shape index: {}]   ;;  %s220_s1 = inlined_call_operand.hbm [shape: f32[32,128], index: 1, kind: input, shape index: {}]   ;;  %s221_s2 = inlined_call_operand.vmem [shape: f32[1,128], index: 2, kind: input, shape index: {}]   ;;  %s222_s3 = inlined_call_operand.hbm [shape: f32[8,128], index: 3, kind: output, shape index: {}]  }
   0x1   :  { %9 = vsyncpa [#allocation6], 0 }
   0x2   :  { %10 = vsyncpa [#allocation4], 0  ;;  %s16_s14 = sshll.u32 %s219_s0, 4  ;;  %s182_s15 = smov [#allocation2]   ;;  %s17_s14 = int_to_ptr.hbm [resolvable:$true] %s16_s14 }
   0x3   :  { %s18_s16 = sshll.u32 %s182_s15, 4  ;;  %s26_s19 = sshll.u32 %s220_s1, 4  ;;  %s19_s16 = int_to_ptr.vmem [resolvable:$true] %s18_s16  ;;  %s27_s19 = int_to_ptr.hbm [resolvable:$true] %s26_s19 }
   0x4   :  { %21 = dma.hbm_to_vmem [thread:$0]  %s17_s14, 128, %s19_s16, [#allocation3]  }
   0x5   :  { %s183_s20 = smov [#allocation5]   ;;  %s184_s22 = smov 128  }
   0x6   :  { %s28_s21 = sshll.u32 %s183_s20, 4  ;;  %s185_s23 = smov 8   ;;  %s29_s21 = int_to_ptr.vmem [resolvable:$true] %s28_s21 }
   0x7   :  { %34 = dma.hbm_to_vmem [thread:$0]  %s27_s19, 512, %s29_s21, [#allocation6], %s184_s22, %s184_s22, %s185_s23  }
   0x8   :  { %176 = dma.done.wait [#allocation3], 128  }
   0x9   :  { %177 = vsyncadd [#allocation3], 4294967168 }
   0xa   :  { %178 = dma.done.wait [#allocation6], 512  }
   0xb   :  { %179 = vsyncadd [#allocation6], 4294966784  ;;  %v49_v0 = vld [vmem:[#allocation5 + $0x18] sm:$0xff]  ;;  %v48_v1 = vld [vmem:[#allocation5 + $0x10] sm:$0xff]  ;;  %vm54_vm0 = vcmask 261120   ;;  %s186_s24 = smov [#allocation7]  }
   0xc   :  { %70 = vmatpush.msra.mxu0 %v49_v0  ;;  %v47_v2 = vld [vmem:[#allocation5 + $0x8] sm:$0xff]  ;;  %v46_v3 = vld [vmem:[#allocation5] sm:$0xff]  ;;  %v45_v4 = vld [vmem:[#allocation2] sm:$0xff]  ;;  %s84_s25 = sshll.u32 %s186_s24, 4  ;;  %s86_s28 = sshll.u32 %s222_s3, 4  ;;  %s85_s25 = int_to_ptr.vmem [resolvable:$true] %s84_s25  ;;  %s87_s28 = int_to_ptr.hbm [resolvable:$true] %s86_s28 }
   0xd   :  { %v103_v5 = vld [vmem:[%s221_s2] ss:$0 sm:$0xff] }
   0xe   :  { %71 = vmatpush.msra.mxu0 %v48_v1 }
  0x10   :  { %72 = vmatpush.msra.mxu0 %v47_v2 }
  0x12   :  { %73 = vmatpush.msra.mxu0 %v46_v3 }
  0x13   :  { %97 = vmatmul.msk.f32.vlgmr.msra.gmra.mxu0 %vm54_vm0, %v45_v4 }
  0x90   :  { %v75_v6 = vpop.f32.mrf.mxu0 }
  0x91   :  { %v76_v7 = vadd.f32 %v103_v5, %v75_v6 }
  0x93   :  { %78 = vst [vmem:[#allocation7] sm:$0xff] %v76_v7 }
  0x94   :  { %89 = dma.vmem_to_hbm [thread:$0]  %s85_s25, 128, %s87_s28, [#allocation4]  }
  0x95   :  { %180 = dma.done.wait [#allocation4], 128  }
  0x96   :  { %181 = vsyncadd [#allocation4], 4294967168 }
  0x97   :  { %94 = vsyncpa [#allocation3], 1 }
  0x98   :  { %95 = vsyncpa [#allocation6], 1 }
  0x99   :  { %96 = vsyncpa [#allocation4], 1 }

</bundles_post_ra>
